<compile_context>
chip_gen: v6e
topology: v6e:2x2x1
jax: 0.10.0
libtpu: 0.0.40
codegen_flags: <defaults>
</compile_context>

<pallas_src>
import functools
import math

import jax
import jax.numpy as jnp
from jax.experimental import pallas as pl
from jax.experimental.pallas import tpu as pltpu

_LANE = 128
_SUBLANE = 8
_TARGET_BLOCK_BYTES = 2 * 1024 * 1024   # per-input slab, per pipeline buffer
_FOLD_CHUNK_ROWS = 512                  # rows folded per inner step (fast path)
_FOLD_CHUNK_BYTES = 512 * 1024          # f32 bytes folded per inner step (3-D path)
_VMEM_LIMIT_BYTES = 32 * 1024 * 1024


def _cdiv(a, b):
    return -(-a // b)


# ---------------------------------------------------------------------------
# Fast path kernel: inputs viewed as (rows, 128); accumulate into (8, 128).
# ---------------------------------------------------------------------------
def _l1_rows_kernel(x_ref, t_ref, m_ref, o_ref, *, block_rows, tail_rows,
                    num_blocks):
    i = pl.program_id(0)

    @pl.when(i == 0)
    def _():
        o_ref[...] = jnp.zeros_like(o_ref)

    def chunk_sum(row0, nrows):
        # row0 / nrows are Python ints (nrows is a multiple of 8).
        x = x_ref[pl.ds(row0, nrows), :].astype(jnp.float32)
        t = t_ref[pl.ds(row0, nrows), :].astype(jnp.float32)
        m = m_ref[pl.ds(row0, nrows), :].astype(jnp.float32)
        part = jnp.abs(x - t) * m
        # (nrows,128)->(nrows/8,8,128) is layout-free; axis-0 sum = pure VPU adds.
        return jnp.sum(part.reshape(nrows // _SUBLANE, _SUBLANE, _LANE), axis=0)

    def fold(nrows):
        # Chunked accumulation keeps the elementwise intermediate small so it
        # stays in vregs instead of staging a multi-MiB f32 temp through VMEM.
        chunk = min(nrows, _FOLD_CHUNK_ROWS)
        n_chunks = nrows // chunk
        rem = nrows - n_chunks * chunk
        acc = jnp.zeros((_SUBLANE, _LANE), jnp.float32)
        for c in range(n_chunks):
            acc = acc + chunk_sum(c * chunk, chunk)
        if rem:
            acc = acc + chunk_sum(n_chunks * chunk, rem)
        return acc

    if tail_rows == block_rows:
        o_ref[...] += fold(block_rows)
    else:
        # Edge handling gated to the single final step; interior steps are
        # branch/mask free.  The edge step reads only its valid rows, so the
        # undefined tail region of the edge block is never touched.
        @pl.when(i < num_blocks - 1)
        def _():
            o_ref[...] += fold(block_rows)

        @pl.when(i == num_blocks - 1)
        def _():
            o_ref[...] += fold(tail_rows)


# ---------------------------------------------------------------------------
# General path kernel: inputs blocked as (bn, H, W); accumulate into (H, W).
# ---------------------------------------------------------------------------
def _l1_nhw_kernel(x_ref, t_ref, m_ref, o_ref, *, bn, tail_bn, num_blocks):
    i = pl.program_id(0)
    _, H, W = x_ref.shape

    @pl.when(i == 0)
    def _():
        o_ref[...] = jnp.zeros_like(o_ref)

    plane_f32_bytes = H * W * 4
    bc = max(1, _FOLD_CHUNK_BYTES // plane_f32_bytes)   # batch items per chunk

    def piece(b0, nbc):
        x = x_ref[pl.ds(b0, nbc), :, :].astype(jnp.float32)
        t = t_ref[pl.ds(b0, nbc), :, :].astype(jnp.float32)
        m = m_ref[pl.ds(b0, nbc), :, :].astype(jnp.float32)
        # Leading-axis fold: pure VPU adds across vreg slabs.
        return jnp.sum(jnp.abs(x - t) * m, axis=0)

    def accum(nb):
        step = min(bc, nb)
        n_chunks = nb // step
        rem = nb - n_chunks * step
        acc = jnp.zeros((H, W), jnp.float32)
        for c in range(n_chunks):
            acc = acc + piece(c * step, step)
        if rem:
            acc = acc + piece(n_chunks * step, rem)
        o_ref[...] += acc

    if tail_bn == bn:
        accum(bn)
    else:
        @pl.when(i < num_blocks - 1)
        def _():
            accum(bn)

        @pl.when(i == num_blocks - 1)
        def _():
            accum(tail_bn)


# ---------------------------------------------------------------------------
# Wrapper
# ---------------------------------------------------------------------------
def my_criterion(inp, target, pixel_weight, mask):
    """Pallas equivalent of MyCriterion.forward.

    `pixel_weight` is accepted for API parity but -- exactly like the PyTorch
    reference (mask_label is never used inside bce_loss) -- it does not affect
    the result.
    """
    del pixel_weight                       # unused in the reference as well
    assert inp.shape == target.shape == mask.shape
    assert inp.ndim == 3, "expected (N, H, W) enhancer maps"
    n_batch, H, W = inp.shape
    total_elems = math.prod(inp.shape)
    itemsize = max(a.dtype.itemsize for a in (inp, target, mask))
    bytes_in = total_elems * sum(a.dtype.itemsize for a in (inp, target, mask))

    compiler_params = pltpu.CompilerParams(
        dimension_semantics=("arbitrary",),
        vmem_limit_bytes=_VMEM_LIMIT_BYTES,
    )

    if total_elems % (_SUBLANE * _LANE) == 0:
        # ---- fast path: free reshape to lane-dense (rows, 128), zero copies.
        rows = total_elems // _LANE                       # multiple of 8
        block_rows = (_TARGET_BLOCK_BYTES // (_LANE * itemsize))
        block_rows = max(_SUBLANE, (block_rows // _SUBLANE) * _SUBLANE)
        block_rows = min(rows, block_rows)                # multiple of 8
        num_blocks = _cdiv(rows, block_rows)
        tail_rows = rows - (num_blocks - 1) * block_rows  # multiple of 8

        x2, t2, m2 = (a.reshape(rows, _LANE) for a in (inp, target, mask))
        in_spec = pl.BlockSpec((block_rows, _LANE), lambda i: (i, 0))
        out_spec = pl.BlockSpec((_SUBLANE, _LANE), lambda i: (0, 0))

        kernel = functools.partial(_l1_rows_kernel, block_rows=block_rows,
                                   tail_rows=tail_rows, num_blocks=num_blocks)
        partials = pl.pallas_call(
            kernel,
            out_shape=jax.ShapeDtypeStruct((_SUBLANE, _LANE), jnp.float32),
            grid_spec=pltpu.PrefetchScalarGridSpec(
                num_scalar_prefetch=0,
                grid=(num_blocks,),
                in_specs=[in_spec, in_spec, in_spec],
                out_specs=out_spec,
            ),
            compiler_params=compiler_params,
            cost_estimate=pl.CostEstimate(
                flops=4 * total_elems, transcendentals=0,
                bytes_accessed=bytes_in + _SUBLANE * _LANE * 4),
        )(x2, t2, m2)
        total = jnp.sum(partials)
    else:
        # ---- general path: block over batch with full (H, W) planes.
        # No padded copy; the ~couple-% lane padding inside the kernel is free
        # compared to an extra HBM round trip.
        plane_bytes = max(1, H * W * itemsize)
        bn = max(1, min(n_batch, _TARGET_BLOCK_BYTES // plane_bytes))
        num_blocks = _cdiv(n_batch, bn)
        tail_bn = n_batch - (num_blocks - 1) * bn

        in_spec = pl.BlockSpec((bn, H, W), lambda i: (i, 0, 0))
        out_spec = pl.BlockSpec((H, W), lambda i: (0, 0))

        kernel = functools.partial(_l1_nhw_kernel, bn=bn, tail_bn=tail_bn,
                                   num_blocks=num_blocks)
        acc_hw = pl.pallas_call(
            kernel,
            out_shape=jax.ShapeDtypeStruct((H, W), jnp.float32),
            grid_spec=pltpu.PrefetchScalarGridSpec(
                num_scalar_prefetch=0,
                grid=(num_blocks,),
                in_specs=[in_spec, in_spec, in_spec],
                out_specs=out_spec,
            ),
            compiler_params=compiler_params,
            cost_estimate=pl.CostEstimate(
                flops=4 * total_elems, transcendentals=0,
                bytes_accessed=bytes_in + H * W * 4),
        )(inp, target, mask)
        total = jnp.sum(acc_hw)

    # torch.mean over per-sample sums == total_sum / N
    return (total / jnp.float32(n_batch)).astype(jnp.float32)


def _reference(inp, target, mask):
    x = inp.astype(jnp.float32)
    t = target.astype(jnp.float32)
    m = mask.astype(jnp.float32)
    return jnp.mean(jnp.sum(jnp.abs(x - t) * m, axis=(1, 2)))


if __name__ == "__main__":
    key = jax.random.PRNGKey(0)
    k1, k2, k3, k4 = jax.random.split(key, 4)

    # Small enhancer-style maps (2*16*16 = 512 elements -> general 3-D path).
    N, H, W = 2, 16, 16
    inp = jax.random.normal(k1, (N, H, W), dtype=jnp.float32)
    target = jax.random.normal(k2, (N, H, W), dtype=jnp.float32)
    pixel_weight = jax.random.uniform(k3, (N, H, W), dtype=jnp.float32)
    mask = jax.random.uniform(k4, (N, H, W), dtype=jnp.float32)

    loss = my_criterion(inp, target, pixel_weight, mask)
    jax.block_until_ready(loss)
    ref = _reference(inp, target, mask)
    assert jnp.allclose(loss, ref, rtol=1e-5, atol=1e-4), (loss, ref)

    # Lane-dense fast path: 5*384*512 = 983040 elements (1024-aligned),
    # 7680 rows -> 4096-row blocks, multi-block grid with a partial tail block.
    kf = jax.random.split(jax.random.PRNGKey(1), 3)
    N2, H2, W2 = 5, 384, 512
    inp2 = jax.random.normal(kf[0], (N2, H2, W2), dtype=jnp.float32)
    tgt2 = jax.random.normal(kf[1], (N2, H2, W2), dtype=jnp.float32)
    msk2 = jax.random.uniform(kf[2], (N2, H2, W2), dtype=jnp.float32)
    loss2 = my_criterion(inp2, tgt2, msk2, msk2)   # pixel_weight is unused
    jax.block_until_ready(loss2)
    ref2 = _reference(inp2, tgt2, msk2)
    assert jnp.allclose(loss2, ref2, rtol=1e-4, atol=1e-2), (loss2, ref2)

    # bf16 inputs stream natively (dtype-aware block sizing); math stays f32.
    inp_b, tgt_b, msk_b = (a.astype(jnp.bfloat16) for a in (inp2, tgt2, msk2))
    loss_b = my_criterion(inp_b, tgt_b, msk_b, msk_b)
    jax.block_until_ready(loss_b)
    ref_b = _reference(inp_b, tgt_b, msk_b)
    assert jnp.allclose(loss_b, ref_b, rtol=1e-3, atol=1.0), (loss_b, ref_b)

    # Unaligned shape, multi-block general path with a partial batch tail (3+1).
    kg = jax.random.split(jax.random.PRNGKey(2), 3)
    N3, H3, W3 = 4, 300, 500
    inp3 = jax.random.normal(kg[0], (N3, H3, W3), dtype=jnp.float32)
    tgt3 = jax.random.normal(kg[1], (N3, H3, W3), dtype=jnp.float32)
    msk3 = jax.random.uniform(kg[2], (N3, H3, W3), dtype=jnp.float32)
    loss3 = my_criterion(inp3, tgt3, msk3, msk3)
    jax.block_until_ready(loss3)
    ref3 = _reference(inp3, tgt3, msk3)
    assert jnp.allclose(loss3, ref3, rtol=1e-4, atol=1e-2), (loss3, ref3)

    print("KERNEL_OK")
</pallas_src>

<mosaic_0001>
module attributes {stable_mosaic.version = 11 : i64} {
  func.func @_l1_nhw_kernel(%arg0: i32, %arg1: memref<2x16x16xf32, #tpu.memory_space<vmem>>, %arg2: memref<2x16x16xf32, #tpu.memory_space<vmem>>, %arg3: memref<2x16x16xf32, #tpu.memory_space<vmem>>, %arg4: memref<16x16xf32, #tpu.memory_space<vmem>>) attributes {dimension_semantics = [#tpu.dimension_semantics<arbitrary>], iteration_bounds = array<i64: 1>, scalar_prefetch = 0 : i64, scratch_operands = 0 : i64, tpu.core_type = #tpu.core_type<tc>, window_params = [{transform_indices = @transform_0, window_bounds = array<i64: 2, 16, 16>}, {transform_indices = @transform_1, window_bounds = array<i64: 2, 16, 16>}, {transform_indices = @transform_2, window_bounds = array<i64: 2, 16, 16>}, {pipeline_mode = #tpu.pipeline_mode<synchronous>, transform_indices = @transform_3, window_bounds = array<i64: 16, 16>}]} {
    %c0_i32 = arith.constant 0 : i32
    %0 = arith.cmpi eq, %arg0, %c0_i32 : i32
    %1 = arith.extui %0 : i1 to i32
    %c0_i32_0 = arith.constant 0 : i32
    %2 = arith.cmpi ne, %1, %c0_i32_0 : i32
    scf.if %2 {
      %cst_14 = arith.constant 0.000000e+00 : f32
      %15 = vector.broadcast %cst_14 : f32 to vector<16x16xf32>
      %c0_15 = arith.constant 0 : index
      %c0_16 = arith.constant 0 : index
      %16 = vector.load %arg4[%c0_15, %c0_16] : memref<16x16xf32, #tpu.memory_space<vmem>>, vector<16x16xf32>
      tpu.vector_store %arg4[%c0_15, %c0_16], %15 {strides = array<i32>} : memref<16x16xf32, #tpu.memory_space<vmem>>, vector<16x16xf32>,
    } else {
    }
    %cst = arith.constant 0.000000e+00 : f32
    %3 = vector.broadcast %cst : f32 to vector<16x16xf32>
    %c0 = arith.constant 0 : index
    %c0_1 = arith.constant 0 : index
    %c0_2 = arith.constant 0 : index
    %4 = vector.load %arg1[%c0, %c0_1, %c0_2] : memref<2x16x16xf32, #tpu.memory_space<vmem>>, vector<2x16x16xf32>
    %c0_3 = arith.constant 0 : index
    %c0_4 = arith.constant 0 : index
    %c0_5 = arith.constant 0 : index
    %5 = vector.load %arg2[%c0_3, %c0_4, %c0_5] : memref<2x16x16xf32, #tpu.memory_space<vmem>>, vector<2x16x16xf32>
    %c0_6 = arith.constant 0 : index
    %c0_7 = arith.constant 0 : index
    %c0_8 = arith.constant 0 : index
    %6 = vector.load %arg3[%c0_6, %c0_7, %c0_8] : memref<2x16x16xf32, #tpu.memory_space<vmem>>, vector<2x16x16xf32>
    %7 = arith.subf %4, %5 : vector<2x16x16xf32>
    %8 = math.absf %7 : vector<2x16x16xf32>
    %9 = arith.mulf %8, %6 : vector<2x16x16xf32>
    %cst_9 = arith.constant dense<0.000000e+00> : vector<16x16xf32>
    %10 = vector.multi_reduction <add>, %9, %cst_9 [0] : vector<2x16x16xf32> to vector<16x16xf32>
    %11 = arith.addf %3, %10 : vector<16x16xf32>
    %c0_10 = arith.constant 0 : index
    %c0_11 = arith.constant 0 : index
    %12 = vector.load %arg4[%c0_10, %c0_11] : memref<16x16xf32, #tpu.memory_space<vmem>>, vector<16x16xf32>
    %13 = arith.addf %12, %11 : vector<16x16xf32>
    %c0_12 = arith.constant 0 : index
    %c0_13 = arith.constant 0 : index
    %14 = vector.load %arg4[%c0_12, %c0_13] : memref<16x16xf32, #tpu.memory_space<vmem>>, vector<16x16xf32>
    tpu.vector_store %arg4[%c0_12, %c0_13], %13 {strides = array<i32>} : memref<16x16xf32, #tpu.memory_space<vmem>>, vector<16x16xf32>,
    return
  }
  func.func @transform_0(%arg0: i32) -> (i32, i32, i32) {
    %c0_i32 = arith.constant 0 : i32
    %c0_i32_0 = arith.constant 0 : i32
    %c0_i32_1 = arith.constant 0 : i32
    return %arg0, %c0_i32, %c0_i32_0 : i32, i32, i32
  }
  func.func @transform_1(%arg0: i32) -> (i32, i32, i32) {
    %c0_i32 = arith.constant 0 : i32
    %c0_i32_0 = arith.constant 0 : i32
    %c0_i32_1 = arith.constant 0 : i32
    return %arg0, %c0_i32, %c0_i32_0 : i32, i32, i32
  }
  func.func @transform_2(%arg0: i32) -> (i32, i32, i32) {
    %c0_i32 = arith.constant 0 : i32
    %c0_i32_0 = arith.constant 0 : i32
    %c0_i32_1 = arith.constant 0 : i32
    return %arg0, %c0_i32, %c0_i32_0 : i32, i32, i32
  }
  func.func @transform_3(%arg0: i32) -> (i32, i32) {
    %c0_i32 = arith.constant 0 : i32
    %c0_i32_0 = arith.constant 0 : i32
    %c0_i32_1 = arith.constant 0 : i32
    return %c0_i32, %c0_i32_0 : i32, i32
  }
}

</mosaic_0001>

<bundles_post_ra>
// kernel: tpu_custom_call.1
= control target key start
LH: loop header
LB: loop body
LE: loop exit
PB: predicated region body
PF: predicated region fallthrough
CT: control target
= control target key end

     0   :  { %8 = vsyncpa [#allocation3], 0  ;;  %s272_s0 = inlined_call_operand.hbm [shape: f32[2,16,16], index: 0, kind: input, shape index: {}]   ;;  %s273_s1 = inlined_call_operand.hbm [shape: f32[2,16,16], index: 1, kind: input, shape index: {}]   ;;  %s274_s2 = inlined_call_operand.hbm [shape: f32[2,16,16], index: 2, kind: input, shape index: {}]   ;;  %s275_s3 = inlined_call_operand.hbm [shape: f32[16,16], index: 3, kind: output, shape index: {}]  }
   0x1   :  { %9 = vsyncpa [#allocation6], 0 }
   0x2   :  { %10 = vsyncpa [#allocation4], 0  ;;  %s213_s12 = smov [#allocation5]   ;;  %s214_s14 = smov [#allocation2]  }
   0x3   :  { %s28_s13 = sshll.u32 %s213_s12, 4  ;;  %s16_s15 = sshll.u32 %s214_s14, 4  ;;  %s29_s13 = int_to_ptr.vmem [resolvable:$true] %s28_s13  ;;  %s17_s15 = int_to_ptr.vmem [resolvable:$true] %s16_s15 }
   0x4   :  { %s135_s16 = scalar_lea.vmem %s29_s13, 512  ;;  %p140_p1 = scmp.lt.s32.totalorder %s29_s13, %s29_s13 }
   0x5   :  { %p136_p0 = scmp.ne.s32.totalorder %s29_s13, %s135_s16  ;;  %p141_p2 = scmp.lt.s32.totalorder %s135_s16, %s135_s16 }
   0x7   :  { %p142_p3 = por %p141_p2, %p140_p1 }
   0x9   :  { %p143_p4 = pnand %p142_p3, %p136_p0 }
   0xb   :  { %146 = shalt.err (!%p143_p4)
}
   0xc   :  { %s215_s17 = smov 128   ;;  %s216_s18 = smov 8  }
   0xd   :  { %34 = dma.hbm_to_vmem [thread:$0]  %s273_s1, 512, %s29_s13, [#allocation6], %s215_s17, %s215_s17, %s216_s18  }
   0xe   :  { %s155_s21 = scalar_lea.vmem %s17_s15, 512  ;;  %p160_p6 = scmp.lt.s32.totalorder %s17_s15, %s17_s15 }
   0xf   :  { %p156_p5 = scmp.ne.s32.totalorder %s17_s15, %s155_s21  ;;  %p161_p7 = scmp.lt.s32.totalorder %s155_s21, %s155_s21 }
  0x11   :  { %p162_p8 = por %p161_p7, %p160_p6 }
  0x13   :  { %p163_p9 = pnand %p162_p8, %p156_p5 }
  0x15   :  { %166 = shalt.err (!%p163_p9)
}
  0x16   :  { %22 = dma.hbm_to_vmem [thread:$0]  %s272_s0, 512, %s17_s15, [#allocation3], %s215_s17, %s215_s17, %s216_s18  }
  0x17   :  { %s217_s24 = smov [#allocation7]  }
  0x18   :  { %s40_s25 = sshll.u32 %s217_s24, 4  ;;  %s41_s25 = int_to_ptr.vmem [resolvable:$true] %s40_s25 }
  0x19   :  { %s175_s26 = scalar_lea.vmem %s41_s25, 512  ;;  %p180_p11 = scmp.lt.s32.totalorder %s41_s25, %s41_s25 }
  0x1a   :  { %p176_p10 = scmp.ne.s32.totalorder %s41_s25, %s175_s26  ;;  %p181_p12 = scmp.lt.s32.totalorder %s175_s26, %s175_s26 }
  0x1c   :  { %p182_p13 = por %p181_p12, %p180_p11 }
  0x1e   :  { %p183_p0 = pnand %p182_p13, %p176_p10 }
  0x20   :  { %186 = shalt.err (!%p183_p0)
}
  0x21   :  { %46 = dma.hbm_to_vmem [thread:$0]  %s274_s2, 512, %s41_s25, [#allocation6], %s215_s17, %s215_s17, %s216_s18  }
  0x22   :  { %207 = dma.done.wait [#allocation3], 512  }
  0x23   :  { %208 = vsyncadd [#allocation3], 4294966784 }
  0x24   :  { %209 = dma.done.wait [#allocation6], 1024  }
  0x25   :  { %210 = vsyncadd [#allocation6], 4294966272  ;;  %vm60_vm0 = vcmask 130048   ;;  %v218_v0 = vmov 0.0   ;;  %v63_v1 = vld [vmem:[#allocation2] sm:$0xff]  ;;  %v65_v2 = vld [vmem:[#allocation2 + $0x10] sm:$0xff] }
  0x26   :  { %61 = vst.msk [vmem:[#allocation8] sm:$0xff] %vm60_vm0, %v218_v0  ;;  %62 = vst.msk [vmem:[#allocation8 + $0x8] sm:$0xff] %vm60_vm0, %v218_v0  ;;  %v67_v3 = vld [vmem:[#allocation5] sm:$0xff]  ;;  %v69_v4 = vld [vmem:[#allocation5 + $0x10] sm:$0xff]  ;;  %s219_s0 = smov [#allocation8]  }
  0x27   :  { %v75_v5 = vsub.f32 %v63_v1, %v67_v3  ;;  %v71_v6 = vld [vmem:[#allocation7] sm:$0xff]  ;;  %v77_v7 = vsub.f32 %v65_v2, %v69_v4  ;;  %v64_v8 = vld [vmem:[#allocation2 + $0x8] sm:$0xff]  ;;  %v66_v9 = vld [vmem:[#allocation2 + $0x18] sm:$0xff]  ;;  %s107_s2 = sshll.u32 %s219_s0, 4  ;;  %s108_s2 = int_to_ptr.vmem [resolvable:$true] %s107_s2 }
  0x28   :  { %v73_v10 = vld [vmem:[#allocation7 + $0x10] sm:$0xff]  ;;  %v68_v12 = vld [vmem:[#allocation5 + $0x8] sm:$0xff]  ;;  %v70_v13 = vld [vmem:[#allocation5 + $0x18] sm:$0xff]  ;;  %s187_s28 = scalar_lea.vmem %s108_s2, 256  ;;  %p192_p2 = scmp.lt.s32.totalorder %s108_s2, %s108_s2 }
  0x29   :  { %v79_v11 = vand.u32 2147483647, %v75_v5  ;;  %v81_v14 = vand.u32 2147483647, %v77_v7  ;;  %v76_v15 = vsub.f32 %v64_v8, %v68_v12  ;;  %v78_v16 = vsub.f32 %v66_v9, %v70_v13  ;;  %v72_v18 = vld [vmem:[#allocation7 + $0x8] sm:$0xff]  ;;  %v74_v19 = vld [vmem:[#allocation7 + $0x18] sm:$0xff]  ;;  %p188_p1 = scmp.ne.s32.totalorder %s108_s2, %s187_s28  ;;  %p193_p3 = scmp.lt.s32.totalorder %s187_s28, %s187_s28 }
  0x2b   :  { %v83_v17 = vmul.f32 %v79_v11, %v71_v6  ;;  %v85_v20 = vmul.f32 %v81_v14, %v73_v10  ;;  %v80_v21 = vand.u32 2147483647, %v76_v15  ;;  %v82_v22 = vand.u32 2147483647, %v78_v16  ;;  %p194_p4 = por %p193_p3, %p192_p2 }
  0x2d   :  { %v88_v23 = vsel %vm60_vm0, %v83_v17, 0.0  ;;  %v89_v24 = vsel %vm60_vm0, %v85_v20, 0.0  ;;  %v96_v25 = vld [vmem:[#allocation8] sm:$0xff]  ;;  %v84_v26 = vmul.f32 %v80_v21, %v72_v18  ;;  %v86_v27 = vmul.f32 %v82_v22, %v74_v19  ;;  %v97_v31 = vld [vmem:[#allocation8 + $0x8] sm:$0xff]  ;;  %p195_p5 = pnand %p194_p4, %p188_p1 }
  0x2e   :  { %v90_v28 = vadd.f32 %v89_v24, %v88_v23 }
  0x2f   :  { %v91_v29 = vsel %vm60_vm0, %v84_v26, 0.0  ;;  %v92_v30 = vsel %vm60_vm0, %v86_v27, 0.0 }
  0x30   :  { %v98_v32 = vadd.f32 %v96_v25, %v90_v28  ;;  %v93_v33 = vadd.f32 %v92_v30, %v91_v29 }
  0x32   :  { %100 = vst.msk [vmem:[#allocation8] sm:$0xff] %vm60_vm0, %v98_v32  ;;  %v99_v34 = vadd.f32 %v97_v31, %v93_v33 }
  0x34   :  { %101 = vst.msk [vmem:[#allocation8 + $0x8] sm:$0xff] %vm60_vm0, %v99_v34 }
  0x35   :  { %198 = shalt.err (!%p195_p5)
}
  0x36   :  { %113 = dma.vmem_to_hbm [thread:$0]  %s108_s2, 256, %s275_s3, [#allocation4], %s215_s17, %s215_s17, %s216_s18  }
  0x37   :  { %211 = dma.done.wait [#allocation4], 256  }
  0x38   :  { %212 = vsyncadd [#allocation4], 4294967040 }
  0x39   :  { %117 = vsyncpa [#allocation3], 1 }
  0x3a   :  { %118 = vsyncpa [#allocation6], 1 }
  0x3b   :  { %119 = vsyncpa [#allocation4], 1 }

</bundles_post_ra>
